<compile_context>
chip_gen: v5e
topology: v5e:2x2
jax: 0.10.0
libtpu: 0.0.40
codegen_flags: <defaults>
</compile_context>

<pallas_src>
import jax
import jax.numpy as jnp
from jax.experimental import pallas as pl
from jax.experimental.pallas import tpu as pltpu

HIDDEN = 768          # BERT hidden size (fixed by nn.Linear(768, 64))
FEAT = 64
NUM_CLASSES = 2
LANES = 128           # pad small feature dims up to one full vreg lane width
BLOCK_B = 512         # batch tile: double-buffered x tiles = 2 * 512*768*4B ~= 3 MiB


def mean_model_head_kernel(x_ref, w1_ref, b1_ref, w2_ref, b2_ref, slab_ref):
    # x_ref:    (TB, 768) f32   CLS features, streamed one batch tile per grid step
    # w1_ref:   (768,128) bf16  [:, :64]       = W1, rest 0        (resident)
    # b1_ref:   (1, 128)  f32   [:, :64]       = b1, rest 0        (resident)
    # w2_ref:   (128,128) bf16  [:64, 64:66]   = W2, rest 0        (resident)
    # b2_ref:   (1, 128)  f32   [:, 64:66]     = b2, rest 0        (resident)
    # slab_ref: (TB, 128) f32   cols 0..63 = feat, cols 64..65 = logits
    x = x_ref[...].astype(jnp.bfloat16)                        # bf16 MXU inputs
    h = jnp.dot(x, w1_ref[...], preferred_element_type=jnp.float32)
    h = jnp.maximum(h + b1_ref[...], 0.0)                      # ReLU; padded cols stay 0
    # TODO(synk): nn.Dropout(p=0.5) is identity in eval mode; training-mode RNG
    # (matching torch's generator) has no clean equivalent, so it is skipped.
    logits = jnp.dot(h.astype(jnp.bfloat16), w2_ref[...],
                     preferred_element_type=jnp.float32)       # cols 64..65 = feat @ W2
    slab_ref[...] = h + logits + b2_ref[...]                   # single lane-dense store


def mean_model_head(last_hidden_state, w1, b1, w2, b2, *, block_b=BLOCK_B):
    """last_hidden_state: (B, S, 768) f32 BERT output.
    Returns (out (B, 2) f32, feature (B, 64) f32)."""
    B, S, H = last_hidden_state.shape
    assert H == HIDDEN

    # Zero-padded, lane-dense parameters (weights stored as (in, out)).
    w1p = jnp.zeros((HIDDEN, LANES), jnp.bfloat16).at[:, :FEAT].set(
        w1.astype(jnp.bfloat16))
    b1p = jnp.zeros((1, LANES), jnp.float32).at[0, :FEAT].set(b1)
    w2p = jnp.zeros((LANES, LANES), jnp.bfloat16).at[
        :FEAT, FEAT:FEAT + NUM_CLASSES].set(w2.astype(jnp.bfloat16))
    b2p = jnp.zeros((1, LANES), jnp.float32).at[0, FEAT:FEAT + NUM_CLASSES].set(b2)

    # Read the CLS token directly inside the pallas_call: collapse (S, H) so the
    # CLS features are exactly columns [0, 768) of each row.  The reshape of a
    # contiguous row-major array is metadata-only; the BlockSpec DMA then pulls
    # only those 768 columns per row (no (B, 768) intermediate in HBM).
    lhs2d = last_hidden_state.reshape(B, S * H)

    tb = min(block_b, max(8, ((B + 7) // 8) * 8))   # keep >= 8 sublanes (f32)
    grid = (pl.cdiv(B, tb),)

    slab = pl.pallas_call(
        mean_model_head_kernel,
        out_shape=jax.ShapeDtypeStruct((B, LANES), jnp.float32),
        grid_spec=pltpu.PrefetchScalarGridSpec(
            num_scalar_prefetch=0,
            grid=grid,
            in_specs=[
                pl.BlockSpec((tb, HIDDEN), lambda i: (i, 0)),     # CLS rows, pipelined
                pl.BlockSpec((HIDDEN, LANES), lambda i: (0, 0)),  # W1 resident
                pl.BlockSpec((1, LANES), lambda i: (0, 0)),       # b1 resident
                pl.BlockSpec((LANES, LANES), lambda i: (0, 0)),   # W2 resident
                pl.BlockSpec((1, LANES), lambda i: (0, 0)),       # b2 resident
            ],
            out_specs=pl.BlockSpec((tb, LANES), lambda i: (i, 0)),
        ),
        compiler_params=pltpu.CompilerParams(
            dimension_semantics=("parallel",),   # shard batch tiles over v7x's 2 TCs
        ),
    )(lhs2d, w1p, b1p, w2p, b2p)

    out = slab[:, FEAT:FEAT + NUM_CLASSES]
    feature = slab[:, :FEAT]
    return out, feature


def init_params(key):
    """Deterministic parameter init mirroring nn.Linear shapes.
    PyTorch stores weight as (out, in); we store the transpose (in, out)."""
    k1, k2, k3, k4 = jax.random.split(key, 4)
    bound1 = 1.0 / jnp.sqrt(HIDDEN)
    w1 = jax.random.uniform(k1, (HIDDEN, FEAT), jnp.float32, -bound1, bound1)
    b1 = jax.random.uniform(k2, (FEAT,), jnp.float32, -bound1, bound1)
    bound2 = 1.0 / jnp.sqrt(FEAT)
    w2 = jax.random.uniform(k3, (FEAT, NUM_CLASSES), jnp.float32, -bound2, bound2)
    b2 = jax.random.uniform(k4, (NUM_CLASSES,), jnp.float32, -bound2, bound2)
    return w1, b1, w2, b2


if __name__ == "__main__":
    key = jax.random.PRNGKey(0)
    k_params, k_hidden = jax.random.split(key)

    # Synthetic stand-in for the frozen pretrained BERT output (no grad):
    # last_hidden_state has shape (batch, seq, 768).
    batch, seq = 2, 8
    last_hidden_state = jax.random.normal(
        k_hidden, (batch, seq, HIDDEN), dtype=jnp.float32)

    w1, b1, w2, b2 = init_params(k_params)

    out, feature = mean_model_head(last_hidden_state, w1, b1, w2, b2)
    jax.block_until_ready((out, feature))

    assert out.shape == (batch, NUM_CLASSES)
    assert feature.shape == (batch, FEAT)

    # Reference 1: plain-JAX with the same bf16-input / f32-accumulate math.
    cls = last_hidden_state[:, 0]
    x_bf = cls.astype(jnp.bfloat16)
    feat_ref = jnp.maximum(
        jnp.dot(x_bf, w1.astype(jnp.bfloat16),
                preferred_element_type=jnp.float32) + b1, 0.0)
    out_ref = jnp.dot(feat_ref.astype(jnp.bfloat16), w2.astype(jnp.bfloat16),
                      preferred_element_type=jnp.float32) + b2
    assert jnp.allclose(feature, feat_ref, atol=5e-3, rtol=5e-3)
    assert jnp.allclose(out, out_ref, atol=5e-3, rtol=5e-3)

    # Reference 2: full f32 math (loose tolerance covers the bf16 cast).
    feat_f32 = jnp.maximum(cls @ w1 + b1, 0.0)
    out_f32 = feat_f32 @ w2 + b2
    assert jnp.allclose(feature, feat_f32, atol=1e-1)
    assert jnp.allclose(out, out_f32, atol=1e-1)

    print("KERNEL_OK")
</pallas_src>

<mosaic_0001>
module attributes {stable_mosaic.version = 11 : i64} {
  func.func @mean_model_head_kernel(%arg0: i32, %arg1: memref<8x768xf32, #tpu.memory_space<vmem>>, %arg2: memref<768x128xbf16, #tpu.memory_space<vmem>>, %arg3: memref<1x128xf32, #tpu.memory_space<vmem>>, %arg4: memref<128x128xbf16, #tpu.memory_space<vmem>>, %arg5: memref<1x128xf32, #tpu.memory_space<vmem>>, %arg6: memref<8x128xf32, #tpu.memory_space<vmem>>) attributes {dimension_semantics = [#tpu.dimension_semantics<parallel>], iteration_bounds = array<i64: 1>, scalar_prefetch = 0 : i64, scratch_operands = 0 : i64, tpu.core_type = #tpu.core_type<tc>, window_params = [{transform_indices = @transform_0, window_bounds = array<i64: 8, 768>}, {pipeline_mode = #tpu.pipeline_mode<synchronous>, transform_indices = @transform_1, window_bounds = array<i64: 768, 128>}, {pipeline_mode = #tpu.pipeline_mode<synchronous>, transform_indices = @transform_2, window_bounds = array<i64: 1, 128>}, {pipeline_mode = #tpu.pipeline_mode<synchronous>, transform_indices = @transform_3, window_bounds = array<i64: 128, 128>}, {pipeline_mode = #tpu.pipeline_mode<synchronous>, transform_indices = @transform_4, window_bounds = array<i64: 1, 128>}, {transform_indices = @transform_5, window_bounds = array<i64: 8, 128>}]} {
    %c0 = arith.constant 0 : index
    %c0_0 = arith.constant 0 : index
    %0 = vector.load %arg1[%c0, %c0_0] : memref<8x768xf32, #tpu.memory_space<vmem>>, vector<8x768xf32>
    %1 = arith.truncf %0 : vector<8x768xf32> to vector<8x768xbf16>
    %c0_1 = arith.constant 0 : index
    %c0_2 = arith.constant 0 : index
    %2 = vector.load %arg2[%c0_1, %c0_2] : memref<768x128xbf16, #tpu.memory_space<vmem>>, vector<768x128xbf16>
    %cst = arith.constant dense<0.000000e+00> : vector<8x128xf32>
    %3 = tpu.matmul %1, %2, %cst {dimension_numbers = #tpu.dot_dimension_numbers<[1], [0], [0], [1], [0, 0, 1, 1], [], []>} : vector<8x768xbf16>, vector<768x128xbf16>, vector<8x128xf32> -> vector<8x128xf32>
    %c0_3 = arith.constant 0 : index
    %c0_4 = arith.constant 0 : index
    %4 = vector.load %arg3[%c0_3, %c0_4] : memref<1x128xf32, #tpu.memory_space<vmem>>, vector<1x128xf32>
    %5 = vector.broadcast %4 : vector<1x128xf32> to vector<8x128xf32>
    %6 = arith.addf %3, %5 : vector<8x128xf32>
    %cst_5 = arith.constant 0.000000e+00 : f32
    %7 = vector.broadcast %cst_5 : f32 to vector<8x128xf32>
    %8 = arith.maximumf %6, %7 : vector<8x128xf32>
    %9 = arith.truncf %8 : vector<8x128xf32> to vector<8x128xbf16>
    %c0_6 = arith.constant 0 : index
    %c0_7 = arith.constant 0 : index
    %10 = vector.load %arg4[%c0_6, %c0_7] : memref<128x128xbf16, #tpu.memory_space<vmem>>, vector<128x128xbf16>
    %cst_8 = arith.constant dense<0.000000e+00> : vector<8x128xf32>
    %11 = tpu.matmul %9, %10, %cst_8 {dimension_numbers = #tpu.dot_dimension_numbers<[1], [0], [0], [1], [0, 0, 1, 1], [], []>} : vector<8x128xbf16>, vector<128x128xbf16>, vector<8x128xf32> -> vector<8x128xf32>
    %12 = arith.addf %8, %11 : vector<8x128xf32>
    %c0_9 = arith.constant 0 : index
    %c0_10 = arith.constant 0 : index
    %13 = vector.load %arg5[%c0_9, %c0_10] : memref<1x128xf32, #tpu.memory_space<vmem>>, vector<1x128xf32>
    %14 = vector.broadcast %13 : vector<1x128xf32> to vector<8x128xf32>
    %15 = arith.addf %12, %14 : vector<8x128xf32>
    %c0_11 = arith.constant 0 : index
    %c0_12 = arith.constant 0 : index
    %16 = vector.load %arg6[%c0_11, %c0_12] : memref<8x128xf32, #tpu.memory_space<vmem>>, vector<8x128xf32>
    tpu.vector_store %arg6[%c0_11, %c0_12], %15 {strides = array<i32>} : memref<8x128xf32, #tpu.memory_space<vmem>>, vector<8x128xf32>,
    return
  }
  func.func @transform_0(%arg0: i32) -> (i32, i32) {
    %c0_i32 = arith.constant 0 : i32
    %c0_i32_0 = arith.constant 0 : i32
    return %arg0, %c0_i32 : i32, i32
  }
  func.func @transform_1(%arg0: i32) -> (i32, i32) {
    %c0_i32 = arith.constant 0 : i32
    %c0_i32_0 = arith.constant 0 : i32
    %c0_i32_1 = arith.constant 0 : i32
    return %c0_i32, %c0_i32_0 : i32, i32
  }
  func.func @transform_2(%arg0: i32) -> (i32, i32) {
    %c0_i32 = arith.constant 0 : i32
    %c0_i32_0 = arith.constant 0 : i32
    %c0_i32_1 = arith.constant 0 : i32
    return %c0_i32, %c0_i32_0 : i32, i32
  }
  func.func @transform_3(%arg0: i32) -> (i32, i32) {
    %c0_i32 = arith.constant 0 : i32
    %c0_i32_0 = arith.constant 0 : i32
    %c0_i32_1 = arith.constant 0 : i32
    return %c0_i32, %c0_i32_0 : i32, i32
  }
  func.func @transform_4(%arg0: i32) -> (i32, i32) {
    %c0_i32 = arith.constant 0 : i32
    %c0_i32_0 = arith.constant 0 : i32
    %c0_i32_1 = arith.constant 0 : i32
    return %c0_i32, %c0_i32_0 : i32, i32
  }
  func.func @transform_5(%arg0: i32) -> (i32, i32) {
    %c0_i32 = arith.constant 0 : i32
    %c0_i32_0 = arith.constant 0 : i32
    return %arg0, %c0_i32 : i32, i32
  }
}

</mosaic_0001>

<bundles_post_ra>
// kernel: tpu_custom_call.1
= control target key start
LH: loop header
LB: loop body
LE: loop exit
PB: predicated region body
PF: predicated region fallthrough
CT: control target
= control target key end

     0   :  { %10 = vsyncpa [#allocation3], 0  ;;  %s1143_s0 = inlined_call_operand.hbm [shape: f32[2,6144], index: 0, kind: input, shape index: {}]   ;;  %s1144_s1 = inlined_call_operand.hbm [shape: bf16[768,128], index: 1, kind: input, shape index: {}]   ;;  %s1145_s2 = inlined_call_operand.vmem [shape: f32[1,128], index: 2, kind: input, shape index: {}]   ;;  %s1146_s3 = inlined_call_operand.hbm [shape: bf16[128,128], index: 3, kind: input, shape index: {}]   ;;  %s1147_s4 = inlined_call_operand.vmem [shape: f32[1,128], index: 4, kind: input, shape index: {}]   ;;  %s1148_s5 = inlined_call_operand.hbm [shape: f32[2,128], index: 5, kind: output, shape index: {}]  }
   0x1   :  { %11 = vsyncpa [#allocation6], 0 }
   0x2   :  { %12 = vsyncpa [#allocation4], 0  ;;  %s30_s20 = sshll.u32 %s1144_s1, 4  ;;  %s31_s20 = int_to_ptr.hbm [resolvable:$true] %s30_s20 }
   0x3   :  { %16 = vsyncadd [#allocation3], 576  ;;  %s1084_s21 = smov [#allocation5]   ;;  %s17_s25 = sshll.u32 %s1143_s0, 4  ;;  %s18_s25 = int_to_ptr.hbm [resolvable:$true] %s17_s25 }
   0x4   :  { %s32_s22 = sshll.u32 %s1084_s21, 4  ;;  %s1085_s26 = smov 64   ;;  %s33_s22 = int_to_ptr.vmem [resolvable:$true] %s32_s22 }
   0x5   :  { %s1086_s27 = smov 4   ;;  %s1087_s28 = smov [#allocation2]  }
   0x6   :  { %38 = dma.hbm_to_vmem [thread:$0]  %s31_s20, 6144, %s33_s22, [#allocation6], %s1085_s26, %s1085_s26, %s1086_s27  }
   0x7   :  { %s19_s29 = sshll.u32 %s1087_s28, 4  ;;  %s45_s1 = sshll.u32 %s1146_s3, 4  ;;  %s20_s29 = int_to_ptr.vmem [resolvable:$true] %s19_s29  ;;  %s46_s1 = int_to_ptr.hbm [resolvable:$true] %s45_s1 }
   0x8   :  { %s1088_s7 = smov 1536   ;;  %s1089_s8 = smov 192  }
   0x9   :  { %s1090_s9 = smov 12   ;;  %s1091_s10 = smov [#allocation7]  }
   0xa   :  { %25 = dma.hbm_to_vmem [thread:$0]  %s18_s25, 192, %s20_s29, [#allocation3], %s1088_s7, %s1089_s8, %s1090_s9  }
   0xb   :  { %s47_s11 = sshll.u32 %s1091_s10, 4  ;;  %s48_s11 = int_to_ptr.vmem [resolvable:$true] %s47_s11 }
   0xc   :  { %53 = dma.hbm_to_vmem [thread:$0]  %s46_s1, 1024, %s48_s11, [#allocation6], %s1085_s26, %s1085_s26, %s1086_s27  }
   0xd   :  { %1078 = dma.done.wait [#allocation3], 768  }
   0xe   :  { %1079 = vsyncadd [#allocation3], 4294966528 }
   0xf   :  { %1080 = dma.done.wait [#allocation6], 7168  }
  0x10   :  { %1081 = vsyncadd [#allocation6], 4294960128  ;;  %v920_v0 = vld [vmem:[#allocation5 + $0x38] sm:$0xff]  ;;  %v919_v2 = vld [vmem:[#allocation5 + $0x30] sm:$0xff] }
  0x11   :  { %v928_v1 = vld [vmem:[#allocation5 + $0x78] sm:$0xff]  ;;  %505 = vmatpush.bf16.msra.mxu0 %v920_v0  ;;  %v927_v3 = vld [vmem:[#allocation5 + $0x70] sm:$0xff]  ;;  %v918_v8 = vld [vmem:[#allocation5 + $0x28] sm:$0xff] }
  0x12   :  { %518 = vmatpush.bf16.msra.mxu1 %v928_v1  ;;  %v936_v4 = vld [vmem:[#allocation5 + $0xb8] sm:$0xff]  ;;  %v935_v6 = vld [vmem:[#allocation5 + $0xb0] sm:$0xff]  ;;  %v926_v9 = vld [vmem:[#allocation5 + $0x68] sm:$0xff] }
  0x13   :  { %v944_v5 = vld [vmem:[#allocation5 + $0xf8] sm:$0xff]  ;;  %531 = vmatpush.bf16.msra.mxu2 %v936_v4  ;;  %v943_v7 = vld [vmem:[#allocation5 + $0xf0] sm:$0xff]  ;;  %v934_v10 = vld [vmem:[#allocation5 + $0xa8] sm:$0xff] }
  0x14   :  { %544 = vmatpush.bf16.msra.mxu3 %v944_v5  ;;  %v942_v11 = vld [vmem:[#allocation5 + $0xe8] sm:$0xff]  ;;  %v917_v12 = vld [vmem:[#allocation5 + $0x20] sm:$0xff]  ;;  %v68_v14 = vld [vmem:[#allocation2] sm:$0xff] }
  0x15   :  { %506 = vmatpush.bf16.msra.mxu0 %v919_v2  ;;  %v925_v13 = vld [vmem:[#allocation5 + $0x60] sm:$0xff]  ;;  %v72_v16 = vld [vmem:[#allocation2 + $0x18] sm:$0xff]  ;;  %v74_v18 = vld [vmem:[#allocation2 + $0x24] sm:$0xff]  ;;  %84 = vst [vmem:[#allocation1] ss:$4 sm:$0xff] %v68_v14 }
  0x16   :  { %519 = vmatpush.bf16.msra.mxu1 %v927_v3  ;;  %v70_v15 = vld [vmem:[#allocation2 + $0xc] sm:$0xff]  ;;  %88 = vst [vmem:[#allocation1 + $0x2] ss:$4 sm:$0xff] %v72_v16  ;;  %v915_v24 = vld [vmem:[#allocation5 + $0x10] sm:$0xff]  ;;  %v69_v26 = vld [vmem:[#allocation2 + $0x8] sm:$0xf] }
  0x17   :  { %532 = vmatpush.bf16.msra.mxu2 %v935_v6  ;;  %v933_v17 = vld [vmem:[#allocation5 + $0xa0] sm:$0xff]  ;;  %86 = vst [vmem:[#allocation1 + $0x1] ss:$4 sm:$0xff] %v70_v15  ;;  %v916_v20 = vld [vmem:[#allocation5 + $0x18] sm:$0xff]  ;;  %v923_v25 = vld [vmem:[#allocation5 + $0x50] sm:$0xff] }
  0x18   :  { %545 = vmatpush.bf16.msra.mxu3 %v943_v7  ;;  %v941_v19 = vld [vmem:[#allocation5 + $0xe0] sm:$0xff]  ;;  %v924_v21 = vld [vmem:[#allocation5 + $0x58] sm:$0xff]  ;;  %90 = vst [vmem:[#allocation1 + $0x3] ss:$4 sm:$0xff] %v74_v18  ;;  %v931_v28 = vld [vmem:[#allocation5 + $0x90] sm:$0xff] }
  0x19   :  { %507 = vmatpush.bf16.msra.mxu0 %v918_v8  ;;  %v932_v22 = vld [vmem:[#allocation5 + $0x98] sm:$0xff]  ;;  %v71_v27 = vld [vmem:[#allocation2 + $0x14] sm:$0xf]  ;;  %92 = vst [vmem:[#allocation1 + $0x20] ss:$4 sm:$0xff] %v69_v26  ;;  %v939_v29 = vld [vmem:[#allocation5 + $0xd0] sm:$0xff] }
  0x1a   :  { %520 = vmatpush.bf16.msra.mxu1 %v926_v9  ;;  %v940_v23 = vld [vmem:[#allocation5 + $0xd8] sm:$0xff]  ;;  %v73_v30 = vld [vmem:[#allocation2 + $0x20] sm:$0xf]  ;;  %94 = vst [vmem:[#allocation1 + $0x21] ss:$4 sm:$0xff] %v71_v27  ;;  %v914_v31 = vld [vmem:[#allocation5 + $0x8] sm:$0xff] }
  0x1b   :  { %533 = vmatpush.bf16.msra.mxu2 %v934_v10  ;;  %v922_v32 = vld [vmem:[#allocation5 + $0x48] sm:$0xff]  ;;  %v75_v33 = vld [vmem:[#allocation2 + $0x2c] sm:$0xf]  ;;  %96 = vst [vmem:[#allocation1 + $0x22] ss:$4 sm:$0xff] %v73_v30  ;;  %v913_v35 = vld [vmem:[#allocation5] sm:$0xff] }
  0x1c   :  { %546 = vmatpush.bf16.msra.mxu3 %v942_v11  ;;  %v930_v34 = vld [vmem:[#allocation5 + $0x88] sm:$0xff]  ;;  %v921_v36 = vld [vmem:[#allocation5 + $0x40] sm:$0xff]  ;;  %98 = vst [vmem:[#allocation1 + $0x23] ss:$4 sm:$0xff] %v75_v33  ;;  %v952_v40 = vld [vmem:[#allocation5 + $0x138] sm:$0xff] }
  0x1d   :  { %508 = vmatpush.bf16.msra.mxu0 %v917_v12  ;;  %v938_v37 = vld [vmem:[#allocation5 + $0xc8] sm:$0xff]  ;;  %v960_v41 = vld [vmem:[#allocation5 + $0x178] sm:$0xff]  ;;  %v929_v42 = vld [vmem:[#allocation5 + $0x80] sm:$0xff] }
  0x1e   :  { %521 = vmatpush.bf16.msra.mxu1 %v925_v13  ;;  %v937_v46 = vld [vmem:[#allocation5 + $0xc0] sm:$0xff]  ;;  %v951_v48 = vld [vmem:[#allocation5 + $0x130] sm:$0xff]  ;;  %v950_v52 = vld [vmem:[#allocation5 + $0x128] sm:$0xff] }
  0x1f   :  { %534 = vmatpush.bf16.msra.mxu2 %v933_v17  ;;  %v99_v38 = vld.sshfl [vmem:[#allocation1] sm:$0xff pattern:$0x73625140]  ;;  %v100_v39 = vld.sshfl [vmem:[#allocation1 + $0x8] sm:$0xff pattern:$0x73625140] }
  0x20   :  { %547 = vmatpush.bf16.msra.mxu3 %v941_v19  ;;  %v111_v43 = vpack.c.bf16 %v99_v38, %v99_v38  ;;  %v112_v44 = vpack.c.bf16 %v100_v39, %v100_v39  ;;  %v101_v45 = vld.sshfl [vmem:[#allocation1 + $0x10] sm:$0xff pattern:$0x73625140]  ;;  %v102_v47 = vld.sshfl [vmem:[#allocation1 + $0x18] sm:$0xff pattern:$0x73625140] }
  0x21   :  { %509 = vmatpush.bf16.msra.mxu0 %v916_v20  ;;  %v959_v49 = vld [vmem:[#allocation5 + $0x170] sm:$0xff]  ;;  %v113_v50 = vpack.c.bf16 %v101_v45, %v101_v45  ;;  %v114_v51 = vpack.c.bf16 %v102_v47, %v102_v47  ;;  %v958_v53 = vld [vmem:[#allocation5 + $0x168] sm:$0xff]  ;;  %v949_v54 = vld [vmem:[#allocation5 + $0x120] sm:$0xff] }
  0x22   :  { %522 = vmatpush.bf16.msra.mxu1 %v924_v21  ;;  %v957_v55 = vld [vmem:[#allocation5 + $0x160] sm:$0xff]  ;;  %v948_v56 = vld [vmem:[#allocation5 + $0x118] sm:$0xff]  ;;  %v947_v58 = vld [vmem:[#allocation5 + $0x110] sm:$0xff] }
  0x23   :  { %535 = vmatpush.bf16.msra.mxu2 %v932_v22  ;;  %v956_v57 = vld [vmem:[#allocation5 + $0x158] sm:$0xff]  ;;  %v955_v59 = vld [vmem:[#allocation5 + $0x150] sm:$0xff]  ;;  %v946_v60 = vld [vmem:[#allocation5 + $0x108] sm:$0xff] }
  0x24   :  { %548 = vmatpush.bf16.msra.mxu3 %v940_v23  ;;  %v954_v61 = vld [vmem:[#allocation5 + $0x148] sm:$0xff]  ;;  %v945_v62 = vld [vmem:[#allocation5 + $0x100] sm:$0xff]  ;;  %v104_v1 = vld.sshfl [vmem:[#allocation1 + $0x28] sm:$0xff pattern:$0x73625140] }
  0x25   :  { %510 = vmatpush.bf16.msra.mxu0 %v915_v24  ;;  %v953_v63 = vld [vmem:[#allocation5 + $0x140] sm:$0xff]  ;;  %v103_v0 = vld.sshfl [vmem:[#allocation1 + $0x20] sm:$0xff pattern:$0x73625140]  ;;  %v116_v3 = vpack.c.bf16 %v104_v1, %v104_v1  ;;  %v968_v4 = vld [vmem:[#allocation7 + $0x38] sm:$0xff] }
  0x26   :  { %523 = vmatpush.bf16.msra.mxu1 %v923_v25  ;;  %v115_v2 = vpack.c.bf16 %v103_v0, %v103_v0  ;;  %v967_v5 = vld [vmem:[#allocation7 + $0x30] sm:$0xff]  ;;  %v966_v6 = vld [vmem:[#allocation7 + $0x28] sm:$0xff]  ;;  %v965_v7 = vld [vmem:[#allocation7 + $0x20] sm:$0xff] }
  0x27   :  { %536 = vmatpush.bf16.msra.mxu2 %v931_v28  ;;  %v964_v8 = vld [vmem:[#allocation7 + $0x18] sm:$0xff]  ;;  %v963_v9 = vld [vmem:[#allocation7 + $0x10] sm:$0xff]  ;;  %v962_v10 = vld [vmem:[#allocation7 + $0x8] sm:$0xff] }
  0x28   :  { %549 = vmatpush.bf16.msra.mxu3 %v939_v29  ;;  %v961_v13 = vld [vmem:[#allocation7] sm:$0xff]  ;;  %v980_v18 = vld [vmem:[%s1145_s2] ss:$0 sm:$0xff] }
  0x29   :  { %511 = vmatpush.bf16.msra.mxu0 %v914_v31  ;;  %v981_v33 = vld [vmem:[%s1147_s4] ss:$0 sm:$0xff] }
  0x2a   :  { %524 = vmatpush.bf16.msra.mxu1 %v922_v32 }
  0x2b   :  { %537 = vmatpush.bf16.msra.mxu2 %v930_v34 }
  0x2c   :  { %550 = vmatpush.bf16.msra.mxu3 %v938_v37 }
  0x2d   :  { %512 = vmatpush.bf16.msra.mxu0 %v913_v35 }
  0x2e   :  { %525 = vmatpush.bf16.msra.mxu1 %v921_v36 }
  0x2f   :  { %538 = vmatpush.bf16.msra.mxu2 %v929_v42 }
  0x30   :  { %513 = vmatmul.bf16.vlgmr.msra.gmra.mxu0 %v111_v43  ;;  %551 = vmatpush.bf16.msra.mxu3 %v937_v46 }
  0x31   :  { %557 = vmatpush.bf16.msrb.mxu0 %v952_v40  ;;  %526 = vmatmul.bf16.vlgmr.msra.gmra.mxu1 %v112_v44 }
  0x32   :  { %570 = vmatpush.bf16.msrb.mxu1 %v960_v41  ;;  %539 = vmatmul.bf16.vlgmr.msra.gmra.mxu2 %v113_v50 }
  0x33   :  { %552 = vmatmul.bf16.vlgmr.msra.gmra.mxu3 %v114_v51  ;;  %649 = vmatpush.bf16.msrb.mxu2 %v968_v4 }
  0x35   :  { %558 = vmatpush.bf16.msrb.mxu0 %v951_v48 }
  0x36   :  { %571 = vmatpush.bf16.msrb.mxu1 %v959_v49 }
  0x37   :  { %650 = vmatpush.bf16.msrb.mxu2 %v967_v5 }
  0x39   :  { %559 = vmatpush.bf16.msrb.mxu0 %v950_v52 }
  0x3a   :  { %572 = vmatpush.bf16.msrb.mxu1 %v958_v53 }
  0x3b   :  { %651 = vmatpush.bf16.msrb.mxu2 %v966_v6 }
  0x3d   :  { %560 = vmatpush.bf16.msrb.mxu0 %v949_v54 }
  0x3e   :  { %573 = vmatpush.bf16.msrb.mxu1 %v957_v55 }
  0x3f   :  { %652 = vmatpush.bf16.msrb.mxu2 %v965_v7 }
  0x41   :  { %561 = vmatpush.bf16.msrb.mxu0 %v948_v56 }
  0x42   :  { %574 = vmatpush.bf16.msrb.mxu1 %v956_v57 }
  0x43   :  { %653 = vmatpush.bf16.msrb.mxu2 %v964_v8 }
  0x45   :  { %562 = vmatpush.bf16.msrb.mxu0 %v947_v58 }
  0x46   :  { %575 = vmatpush.bf16.msrb.mxu1 %v955_v59 }
  0x47   :  { %654 = vmatpush.bf16.msrb.mxu2 %v963_v9 }
  0x49   :  { %563 = vmatpush.bf16.msrb.mxu0 %v946_v60 }
  0x4a   :  { %576 = vmatpush.bf16.msrb.mxu1 %v954_v61 }
  0x4b   :  { %655 = vmatpush.bf16.msrb.mxu2 %v962_v10 }
  0x4d   :  { %564 = vmatpush.bf16.msrb.mxu0 %v945_v62 }
  0x4e   :  { %577 = vmatpush.bf16.msrb.mxu1 %v953_v63 }
  0x4f   :  { %656 = vmatpush.bf16.msrb.mxu2 %v961_v13 }
  0x50   :  { %565 = vmatmul.bf16.vlgmr.msrb.gmra.mxu0 %v115_v2 }
  0x51   :  { %578 = vmatmul.bf16.vlgmr.msrb.gmra.mxu1 %v116_v3 }
  0xad   :  { %v514_v11 = vpop.f32.mrf.mxu0 }
  0xae   :  { %v527_v12 = vpop.f32.mrf.mxu1  ;;  %v515_v19 = vadd.f32 %v980_v18, %v514_v11 }
  0xb0   :  { %v528_v22 = vadd.f32 %v527_v12, %v515_v19 }
  0xb5   :  { %v516_v14 = vpop.f32.mrf.mxu0  ;;  %v540_v16 = vpop.f32.mrf.mxu2 }
  0xb6   :  { %v529_v15 = vpop.f32.mrf.mxu1  ;;  %v553_v17 = vpop.f32.mrf.mxu3  ;;  %v541_v23 = vadd.f32 %v540_v16, %v528_v22 }
  0xb8   :  { %v554_v24 = vadd.f32 %v553_v17, %v541_v23 }
  0xbd   :  { %v542_v20 = vpop.f32.mrf.mxu2 }
  0xbe   :  { %v555_v21 = vpop.f32.mrf.mxu3 }
  0xcd   :  { %v566_v25 = vpop.f32.mrf.mxu0 }
  0xce   :  { %v579_v26 = vpop.f32.mrf.mxu1  ;;  %v567_v27 = vadd.f32 %v566_v25, %v554_v24 }
  0xd0   :  { %v580_v28 = vadd.f32 %v579_v26, %v567_v27 }
  0xd2   :  { %v583_v29 = vmax.f32 %v580_v28, 0.0 }
  0xd4   :  { %v584_v30 = vpack.c.bf16 %v583_v29, %v583_v29 }
  0xd5   :  { %v568_v31 = vpop.f32.mrf.mxu0 }
  0xd6   :  { %v581_v32 = vpop.f32.mrf.mxu1  ;;  %657 = vmatmul.bf16.vlgmr.msrb.gmra.mxu2 %v584_v30 }
 0x159   :  { %v658_v34 = vpop.f32.mrf.mxu2 }
 0x15a   :  { %v662_v35 = vadd.f32 %v658_v34, %v583_v29 }
 0x15c   :  { %v667_v36 = vadd.f32 %v981_v33, %v662_v35 }
 0x15e   :  { %668 = vst [vmem:[#allocation8] sm:$0xff] %v667_v36 }
 0x161   :  { %v660_v37 = vpop.f32.mrf.mxu2 }
 0x162   :  { %672 = vsyncadd [#allocation4], 96  ;;  %s675_s15 = sshll.u32 %s1148_s5, 4  ;;  %s1092_s16 = smov [#allocation8]   ;;  %s676_s15 = int_to_ptr.hbm [resolvable:$true] %s675_s15 }
 0x163   :  { %s673_s17 = sshll.u32 %s1092_s16, 4  ;;  %s1093_s18 = smov 32   ;;  %s674_s17 = int_to_ptr.vmem [resolvable:$true] %s673_s17 }
 0x164   :  { %s1094_s19 = smov 2  }
 0x165   :  { %681 = dma.vmem_to_hbm [thread:$0]  %s674_s17, 32, %s676_s15, [#allocation4], %s1093_s18, %s1093_s18, %s1094_s19  }
 0x166   :  { %1082 = dma.done.wait [#allocation4], 128  }
 0x167   :  { %1083 = vsyncadd [#allocation4], 4294967168 }
 0x168   :  { %686 = vsyncpa [#allocation3], 1 }
 0x169   :  { %687 = vsyncpa [#allocation6], 1 }
 0x16a   :  { %688 = vsyncpa [#allocation4], 1 }

</bundles_post_ra>
